<compile_context>
chip_gen: v7x
topology: tpu7x:2x2x1
jax: 0.10.0
libtpu: 0.0.40
codegen_flags: <defaults>
</compile_context>

<pallas_src>
import functools
import math

import jax
import jax.numpy as jnp
from jax.experimental import pallas as pl
from jax.experimental.pallas import tpu as pltpu

NUM_LAYERS = 4            # ResidualMLP default
NUM_RESIDUAL = NUM_LAYERS - 1
BN_EPS = 1e-5
_INV_SQRT2 = 1.0 / math.sqrt(2.0)


def _gelu_exact(x):
    # nn.GELU() default: 0.5 * x * (1 + erf(x / sqrt(2)))
    return 0.5 * x * (1.0 + jax.lax.erf(x * _INV_SQRT2))


# --------------------------------------------------------------------------- #
# Kernel
# --------------------------------------------------------------------------- #
def residual_mlp_kernel(bf_ref, x_ref, w_ref, b_ref, wf_ref, out_ref):
    """One batch tile of the full forward pass.

    bf_ref : (1, 1)            SMEM  final Linear bias (scalar)
    x_ref  : (TB, D)           VMEM  input tile, f32
    w_ref  : (L-1, D, D)       VMEM  BN-folded hidden weights, bf16, (in, out) layout
    b_ref  : (L-1, 1, D)       VMEM  BN-folded hidden biases, f32
    wf_ref : (1, D)            VMEM  final Linear weight as a lane-major row, f32
    out_ref: (TB, 1)           VMEM  logits, f32
    """
    x = x_ref[...].astype(jnp.float32)                       # residual carried in f32
    for i in range(NUM_RESIDUAL):                            # static unroll (3 layers)
        # MXU matmul in bf16, f32 accumulation.
        h = jnp.dot(x.astype(jnp.bfloat16), w_ref[i],
                    preferred_element_type=jnp.float32)
        h = _gelu_exact(h + b_ref[i])                        # bias + GELU in f32 (VPU/EUP)
        # Dropout is identity at inference.
        x = h + x                                            # residual connection

    # Final Linear(D, 1): VPU multiply + XLU lane reduction instead of an N=1 MXU matmul.
    logits = jnp.sum(x * wf_ref[...], axis=-1, keepdims=True) + bf_ref[0, 0]
    out_ref[...] = logits.astype(out_ref.dtype)


# --------------------------------------------------------------------------- #
# Wrapper
# --------------------------------------------------------------------------- #
def _round_up(v, m):
    return ((v + m - 1) // m) * m


def _choose_batch_tile(B):
    # Small batches: one tile.  Large batches: 512 rows per tile (multiple of 8),
    # sized conservatively against v7x's 64 MiB VMEM while still pipelining well.
    return min(_round_up(max(B, 1), 8), 512)


@jax.jit
def residual_mlp_forward(x, w_folded_bf16, b_folded, wf_row, bf11):
    """x: (B, D) f32.  Returns (B, 1) f32 logits."""
    B, D = x.shape
    TB = _choose_batch_tile(B)
    num_blocks = pl.cdiv(B, TB)
    B_pad = num_blocks * TB
    x_p = x if B_pad == B else jnp.pad(x, ((0, B_pad - B), (0, 0)))

    # Advisory cost estimate for XLA's scheduler.
    flops = 2 * B_pad * D * D * NUM_RESIDUAL + 3 * B_pad * D
    cost = pl.CostEstimate(
        flops=flops,
        transcendentals=B_pad * D * NUM_RESIDUAL,
        bytes_accessed=(x_p.size * 4 + w_folded_bf16.size * 2
                        + b_folded.size * 4 + wf_row.size * 4 + 4 + B_pad * 4),
    )

    # VMEM budget: double-buffered x/out tiles + resident folded weights (+ margin).
    needed = (2 * TB * D * 4 + 2 * TB * 4
              + w_folded_bf16.size * 2 + b_folded.size * 4 + wf_row.size * 4)
    vmem_limit = int(min(max(4 * needed, 16 << 20), 96 << 20))

    out = pl.pallas_call(
        residual_mlp_kernel,
        out_shape=jax.ShapeDtypeStruct((B_pad, 1), jnp.float32),
        grid=(num_blocks,),
        in_specs=[
            # Final scalar bias: SMEM, avoids an (8,128)-padded VMEM slab.
            pl.BlockSpec(memory_space=pltpu.MemorySpace.SMEM),
            # Input tile: pipelined over the batch grid.
            pl.BlockSpec((TB, D), lambda i: (i, 0)),
            # Folded weights / biases: constant index_map -> resident in VMEM.
            pl.BlockSpec((NUM_RESIDUAL, D, D), lambda i: (0, 0, 0)),
            pl.BlockSpec((NUM_RESIDUAL, 1, D), lambda i: (0, 0, 0)),
            pl.BlockSpec((1, D), lambda i: (0, 0)),
        ],
        out_specs=pl.BlockSpec((TB, 1), lambda i: (i, 0)),
        compiler_params=pltpu.CompilerParams(
            dimension_semantics=("parallel",),
            vmem_limit_bytes=vmem_limit,
        ),
        cost_estimate=cost,
    )(bf11, x_p, w_folded_bf16, b_folded, wf_row)

    return out if B_pad == B else out[:B]


# --------------------------------------------------------------------------- #
# Parameter construction / BN folding / references
# --------------------------------------------------------------------------- #
def make_params(key, in_dim):
    """Deterministic init mirroring nn.Linear / BatchNorm1d defaults (fresh module)."""
    D = in_dim
    keys = jax.random.split(key, 2 * NUM_RESIDUAL + 2)
    bound = 1.0 / math.sqrt(D)

    # Hidden residual layers: Linear(D, D) weights stored as (in, out).
    w = jnp.stack([
        jax.random.uniform(keys[2 * i], (D, D), jnp.float32, -bound, bound)
        for i in range(NUM_RESIDUAL)
    ])
    b = jnp.stack([
        jax.random.uniform(keys[2 * i + 1], (1, D), jnp.float32, -bound, bound)
        for i in range(NUM_RESIDUAL)
    ])
    # BatchNorm1d fresh-module state (eval mode uses running stats).
    gamma = jnp.ones((NUM_RESIDUAL, 1, D), jnp.float32)
    beta = jnp.zeros((NUM_RESIDUAL, 1, D), jnp.float32)
    mean = jnp.zeros((NUM_RESIDUAL, 1, D), jnp.float32)
    var = jnp.ones((NUM_RESIDUAL, 1, D), jnp.float32)

    # Final layer: Linear(D, 1), no norm / activation.
    wf = jax.random.uniform(keys[-2], (D, 1), jnp.float32, -bound, bound)
    bf = jax.random.uniform(keys[-1], (1, 1), jnp.float32, -bound, bound)
    return w, b, gamma, beta, mean, var, wf, bf


def fold_batchnorm(w, b, gamma, beta, mean, var):
    """Fold eval-mode BatchNorm1d into the preceding Linear.

    y = ((x @ W + b) - mean) * gamma * rsqrt(var + eps) + beta
      =  x @ (W * s) + ((b - mean) * s + beta),   s = gamma * rsqrt(var + eps)
    """
    s = gamma * jax.lax.rsqrt(var + BN_EPS)       # (L-1, 1, D), scales output features
    w_folded = w * s
    b_folded = (b - mean) * s + beta
    return w_folded, b_folded


def reference_forward_exact(x, w, b, gamma, beta, mean, var, wf, bf):
    """Pure-JAX, full-f32, unfolded reference (PyTorch-faithful semantics)."""
    h = x.astype(jnp.float32)
    for i in range(NUM_RESIDUAL):
        y = h @ w[i] + b[i]
        y = (y - mean[i]) * jax.lax.rsqrt(var[i] + BN_EPS) * gamma[i] + beta[i]
        h = _gelu_exact(y) + h
    return h @ wf + bf


def reference_forward_folded(x, w_bf16, b_folded, wf_row, bf11):
    """Pure-JAX reference mirroring the kernel's exact arithmetic (bf16 matmuls)."""
    h = x.astype(jnp.float32)
    for i in range(NUM_RESIDUAL):
        y = jnp.dot(h.astype(jnp.bfloat16), w_bf16[i],
                    preferred_element_type=jnp.float32) + b_folded[i]
        h = _gelu_exact(y) + h
    return jnp.sum(h * wf_row, axis=-1, keepdims=True) + bf11[0, 0]


# --------------------------------------------------------------------------- #
# Main
# --------------------------------------------------------------------------- #
if __name__ == "__main__":
    B, D = 8, 32                      # small: batch=8, feature dim=32
    key = jax.random.PRNGKey(0)
    kx, kp = jax.random.split(key)
    x = jax.random.normal(kx, (B, D), jnp.float32)
    w, b, gamma, beta, mean, var, wf, bf = make_params(kp, D)

    # Wrapper-side prep: fold BN, cast hidden weights to bf16, lane-major final weight.
    w_folded, b_folded = fold_batchnorm(w, b, gamma, beta, mean, var)
    w_bf16 = w_folded.astype(jnp.bfloat16)
    wf_row = wf.reshape(1, D)         # (D, 1) -> (1, D) row for VPU dot
    bf11 = bf.reshape(1, 1)

    out = residual_mlp_forward(x, w_bf16, b_folded, wf_row, bf11)
    out = jax.block_until_ready(out)

    ref_impl = reference_forward_folded(x, w_bf16, b_folded, wf_row, bf11)
    ref_exact = reference_forward_exact(x, w, b, gamma, beta, mean, var, wf, bf)

    assert out.shape == (B, 1)
    # Kernel vs. identical-arithmetic reference: tight.
    assert jnp.allclose(out, ref_impl, atol=1e-3, rtol=1e-3), (
        f"impl max abs err {jnp.max(jnp.abs(out - ref_impl))}")
    # Kernel vs. full-f32 PyTorch-faithful reference: loose (bf16 weight rounding).
    assert jnp.allclose(out, ref_exact, atol=5e-2, rtol=5e-2), (
        f"exact max abs err {jnp.max(jnp.abs(out - ref_exact))}")
    print("KERNEL_OK")
</pallas_src>

<mosaic_0001>
module attributes {stable_mosaic.version = 11 : i64} {
  func.func @residual_mlp_kernel(%arg0: i32, %arg1: memref<1x1xf32, #tpu.memory_space<smem>>, %arg2: memref<8x32xf32, #tpu.memory_space<vmem>>, %arg3: memref<3x32x32xbf16, #tpu.memory_space<vmem>>, %arg4: memref<3x1x32xf32, #tpu.memory_space<vmem>>, %arg5: memref<1x32xf32, #tpu.memory_space<vmem>>, %arg6: memref<8x1xf32, #tpu.memory_space<vmem>>) attributes {dimension_semantics = [#tpu.dimension_semantics<parallel>], iteration_bounds = array<i64: 1>, scalar_prefetch = 0 : i64, scratch_operands = 0 : i64, tpu.core_type = #tpu.core_type<tc>, window_params = [{transform_indices = @transform_0, window_bounds = array<i64: 1, 1>}, {transform_indices = @transform_1, window_bounds = array<i64: 8, 32>}, {pipeline_mode = #tpu.pipeline_mode<synchronous>, transform_indices = @transform_2, window_bounds = array<i64: 3, 32, 32>}, {pipeline_mode = #tpu.pipeline_mode<synchronous>, transform_indices = @transform_3, window_bounds = array<i64: 3, 1, 32>}, {pipeline_mode = #tpu.pipeline_mode<synchronous>, transform_indices = @transform_4, window_bounds = array<i64: 1, 32>}, {transform_indices = @transform_5, window_bounds = array<i64: 8, 1>}]} {
    %c0 = arith.constant 0 : index
    %c0_0 = arith.constant 0 : index
    %0 = vector.load %arg2[%c0, %c0_0] : memref<8x32xf32, #tpu.memory_space<vmem>>, vector<8x32xf32>
    %1 = arith.truncf %0 : vector<8x32xf32> to vector<8x32xbf16>
    %c0_1 = arith.constant 0 : index
    %c0_2 = arith.constant 0 : index
    %c0_3 = arith.constant 0 : index
    %2 = vector.load %arg3[%c0_1, %c0_2, %c0_3] : memref<3x32x32xbf16, #tpu.memory_space<vmem>>, vector<1x32x32xbf16>
    %3 = vector.shape_cast %2 : vector<1x32x32xbf16> to vector<32x32xbf16>
    %cst = arith.constant dense<0.000000e+00> : vector<8x32xf32>
    %4 = tpu.matmul %1, %3, %cst {dimension_numbers = #tpu.dot_dimension_numbers<[1], [0], [0], [1], [0, 0, 1, 1], [], []>} : vector<8x32xbf16>, vector<32x32xbf16>, vector<8x32xf32> -> vector<8x32xf32>
    %c0_4 = arith.constant 0 : index
    %c0_5 = arith.constant 0 : index
    %c0_6 = arith.constant 0 : index
    %5 = vector.load %arg4[%c0_4, %c0_5, %c0_6] : memref<3x1x32xf32, #tpu.memory_space<vmem>>, vector<1x1x32xf32>
    %6 = vector.shape_cast %5 : vector<1x1x32xf32> to vector<1x32xf32>
    %7 = vector.broadcast %6 : vector<1x32xf32> to vector<8x32xf32>
    %8 = arith.addf %4, %7 : vector<8x32xf32>
    %cst_7 = arith.constant 5.000000e-01 : f32
    %9 = vector.broadcast %cst_7 : f32 to vector<8x32xf32>
    %10 = arith.mulf %9, %8 : vector<8x32xf32>
    %cst_8 = arith.constant 0.707106769 : f32
    %11 = vector.broadcast %cst_8 : f32 to vector<8x32xf32>
    %12 = arith.mulf %8, %11 : vector<8x32xf32>
    %13 = math.erf %12 : vector<8x32xf32>
    %cst_9 = arith.constant 1.000000e+00 : f32
    %14 = vector.broadcast %cst_9 : f32 to vector<8x32xf32>
    %15 = arith.addf %14, %13 : vector<8x32xf32>
    %16 = arith.mulf %10, %15 : vector<8x32xf32>
    %17 = arith.addf %16, %0 : vector<8x32xf32>
    %18 = arith.truncf %17 : vector<8x32xf32> to vector<8x32xbf16>
    %c1 = arith.constant 1 : index
    %c0_10 = arith.constant 0 : index
    %c0_11 = arith.constant 0 : index
    %19 = vector.load %arg3[%c1, %c0_10, %c0_11] : memref<3x32x32xbf16, #tpu.memory_space<vmem>>, vector<1x32x32xbf16>
    %20 = vector.shape_cast %19 : vector<1x32x32xbf16> to vector<32x32xbf16>
    %cst_12 = arith.constant dense<0.000000e+00> : vector<8x32xf32>
    %21 = tpu.matmul %18, %20, %cst_12 {dimension_numbers = #tpu.dot_dimension_numbers<[1], [0], [0], [1], [0, 0, 1, 1], [], []>} : vector<8x32xbf16>, vector<32x32xbf16>, vector<8x32xf32> -> vector<8x32xf32>
    %c1_13 = arith.constant 1 : index
    %c0_14 = arith.constant 0 : index
    %c0_15 = arith.constant 0 : index
    %22 = vector.load %arg4[%c1_13, %c0_14, %c0_15] : memref<3x1x32xf32, #tpu.memory_space<vmem>>, vector<1x1x32xf32>
    %23 = vector.shape_cast %22 : vector<1x1x32xf32> to vector<1x32xf32>
    %24 = vector.broadcast %23 : vector<1x32xf32> to vector<8x32xf32>
    %25 = arith.addf %21, %24 : vector<8x32xf32>
    %cst_16 = arith.constant 5.000000e-01 : f32
    %26 = vector.broadcast %cst_16 : f32 to vector<8x32xf32>
    %27 = arith.mulf %26, %25 : vector<8x32xf32>
    %cst_17 = arith.constant 0.707106769 : f32
    %28 = vector.broadcast %cst_17 : f32 to vector<8x32xf32>
    %29 = arith.mulf %25, %28 : vector<8x32xf32>
    %30 = math.erf %29 : vector<8x32xf32>
    %cst_18 = arith.constant 1.000000e+00 : f32
    %31 = vector.broadcast %cst_18 : f32 to vector<8x32xf32>
    %32 = arith.addf %31, %30 : vector<8x32xf32>
    %33 = arith.mulf %27, %32 : vector<8x32xf32>
    %34 = arith.addf %33, %17 : vector<8x32xf32>
    %35 = arith.truncf %34 : vector<8x32xf32> to vector<8x32xbf16>
    %c2 = arith.constant 2 : index
    %c0_19 = arith.constant 0 : index
    %c0_20 = arith.constant 0 : index
    %36 = vector.load %arg3[%c2, %c0_19, %c0_20] : memref<3x32x32xbf16, #tpu.memory_space<vmem>>, vector<1x32x32xbf16>
    %37 = vector.shape_cast %36 : vector<1x32x32xbf16> to vector<32x32xbf16>
    %cst_21 = arith.constant dense<0.000000e+00> : vector<8x32xf32>
    %38 = tpu.matmul %35, %37, %cst_21 {dimension_numbers = #tpu.dot_dimension_numbers<[1], [0], [0], [1], [0, 0, 1, 1], [], []>} : vector<8x32xbf16>, vector<32x32xbf16>, vector<8x32xf32> -> vector<8x32xf32>
    %c2_22 = arith.constant 2 : index
    %c0_23 = arith.constant 0 : index
    %c0_24 = arith.constant 0 : index
    %39 = vector.load %arg4[%c2_22, %c0_23, %c0_24] : memref<3x1x32xf32, #tpu.memory_space<vmem>>, vector<1x1x32xf32>
    %40 = vector.shape_cast %39 : vector<1x1x32xf32> to vector<1x32xf32>
    %41 = vector.broadcast %40 : vector<1x32xf32> to vector<8x32xf32>
    %42 = arith.addf %38, %41 : vector<8x32xf32>
    %cst_25 = arith.constant 5.000000e-01 : f32
    %43 = vector.broadcast %cst_25 : f32 to vector<8x32xf32>
    %44 = arith.mulf %43, %42 : vector<8x32xf32>
    %cst_26 = arith.constant 0.707106769 : f32
    %45 = vector.broadcast %cst_26 : f32 to vector<8x32xf32>
    %46 = arith.mulf %42, %45 : vector<8x32xf32>
    %47 = math.erf %46 : vector<8x32xf32>
    %cst_27 = arith.constant 1.000000e+00 : f32
    %48 = vector.broadcast %cst_27 : f32 to vector<8x32xf32>
    %49 = arith.addf %48, %47 : vector<8x32xf32>
    %50 = arith.mulf %44, %49 : vector<8x32xf32>
    %51 = arith.addf %50, %34 : vector<8x32xf32>
    %c0_28 = arith.constant 0 : index
    %c0_29 = arith.constant 0 : index
    %52 = vector.load %arg5[%c0_28, %c0_29] : memref<1x32xf32, #tpu.memory_space<vmem>>, vector<1x32xf32>
    %53 = vector.broadcast %52 : vector<1x32xf32> to vector<8x32xf32>
    %54 = arith.mulf %51, %53 : vector<8x32xf32>
    %cst_30 = arith.constant dense<0.000000e+00> : vector<8xf32>
    %55 = vector.multi_reduction <add>, %54, %cst_30 [1] : vector<8x32xf32> to vector<8xf32>
    %56 = vector.shape_cast %55 : vector<8xf32> to vector<8x1xf32>
    %c0_31 = arith.constant 0 : index
    %c0_32 = arith.constant 0 : index
    %57 = memref.load %arg1[%c0_31, %c0_32] : memref<1x1xf32, #tpu.memory_space<smem>>
    %58 = vector.broadcast %57 : f32 to vector<8x1xf32>
    %59 = arith.addf %56, %58 : vector<8x1xf32>
    %c0_33 = arith.constant 0 : index
    %c0_34 = arith.constant 0 : index
    %60 = vector.load %arg6[%c0_33, %c0_34] : memref<8x1xf32, #tpu.memory_space<vmem>>, vector<8x1xf32>
    tpu.vector_store %arg6[%c0_33, %c0_34], %59 {strides = array<i32>} : memref<8x1xf32, #tpu.memory_space<vmem>>, vector<8x1xf32>,
    return
  }
  func.func @transform_0(%arg0: i32) -> (i32, i32) {
    %c0_i32 = arith.constant 0 : i32
    %c0_i32_0 = arith.constant 0 : i32
    %c0_i32_1 = arith.constant 0 : i32
    return %c0_i32, %c0_i32_0 : i32, i32
  }
  func.func @transform_1(%arg0: i32) -> (i32, i32) {
    %c0_i32 = arith.constant 0 : i32
    %c0_i32_0 = arith.constant 0 : i32
    return %arg0, %c0_i32 : i32, i32
  }
  func.func @transform_2(%arg0: i32) -> (i32, i32, i32) {
    %c0_i32 = arith.constant 0 : i32
    %c0_i32_0 = arith.constant 0 : i32
    %c0_i32_1 = arith.constant 0 : i32
    %c0_i32_2 = arith.constant 0 : i32
    return %c0_i32, %c0_i32_0, %c0_i32_1 : i32, i32, i32
  }
  func.func @transform_3(%arg0: i32) -> (i32, i32, i32) {
    %c0_i32 = arith.constant 0 : i32
    %c0_i32_0 = arith.constant 0 : i32
    %c0_i32_1 = arith.constant 0 : i32
    %c0_i32_2 = arith.constant 0 : i32
    return %c0_i32, %c0_i32_0, %c0_i32_1 : i32, i32, i32
  }
  func.func @transform_4(%arg0: i32) -> (i32, i32) {
    %c0_i32 = arith.constant 0 : i32
    %c0_i32_0 = arith.constant 0 : i32
    %c0_i32_1 = arith.constant 0 : i32
    return %c0_i32, %c0_i32_0 : i32, i32
  }
  func.func @transform_5(%arg0: i32) -> (i32, i32) {
    %c0_i32 = arith.constant 0 : i32
    %c0_i32_0 = arith.constant 0 : i32
    return %arg0, %c0_i32 : i32, i32
  }
}

</mosaic_0001>

<bundles_post_ra>
// kernel: residual_mlp_forward.1
= control target key start
LH: loop header
LB: loop body
LE: loop exit
PB: predicated region body
PF: predicated region fallthrough
CT: control target
= control target key end

     0   :  { %11 = vsyncpa [#allocation4], 0  ;;  %s498_s0 = inlined_call_operand.<no memory space> [shape: f32[1,1], index: 0, kind: input, shape index: {}]   ;;  %s499_s1 = inlined_call_operand.hbm [shape: f32[8,32], index: 1, kind: input, shape index: {}]   ;;  %s500_s2 = inlined_call_operand.hbm [shape: bf16[3,32,32], index: 2, kind: input, shape index: {}]   ;;  %s501_s3 = inlined_call_operand.vmem [shape: f32[3,1,32], index: 3, kind: input, shape index: {}]   ;;  %s502_s4 = inlined_call_operand.vmem [shape: f32[1,32], index: 4, kind: input, shape index: {}]   ;;  %s503_s5 = inlined_call_operand.vmem [shape: f32[8,1], index: 5, kind: output, shape index: {}]  }
   0x1   :  { %12 = vsyncpa [#allocation6], 0  ;;  %s409_s18 = smov [#allocation3]   ;;  %s410_s20 = smov [#allocation5]  }
   0x2   :  { %s21_s19 = sshll.u32 %s409_s18, 4  ;;  %s30_s21 = sshll.u32 %s410_s20, 4  ;;  %s22_s19 = int_to_ptr.vmem [resolvable:$true] %s21_s19  ;;  %s445_s21 = int_to_ptr.vmem [resolvable:$true] %s30_s21 }
   0x3   :  { %s361_s24 = scalar_lea.hbm %s499_s1, 128 }
   0x4   :  { %p362_p0 = scmp.ne.s32.totalorder %s499_s1, %s361_s24  ;;  %p365_p1 = scmp.lt.u32.totalorder %s361_s24, %s499_s1 }
   0x6   :  { %p367_p2 = pnand %p365_p1, %p362_p0 }
   0x8   :  { %370 = shalt.err (!%p367_p2)
}
   0x9   :  { %s371_s29 = scalar_lea.vmem %s22_s19, 128  ;;  %p376_p4 = scmp.lt.s32.totalorder %s22_s19, %s22_s19 }
   0xa   :  { %p372_p3 = scmp.ne.s32.totalorder %s22_s19, %s371_s29  ;;  %p377_p5 = scmp.lt.s32.totalorder %s371_s29, %s371_s29 }
   0xc   :  { %p378_p6 = por %p377_p5, %p376_p4 }
   0xe   :  { %p379_p7 = pnand %p378_p6, %p372_p3 }
  0x10   :  { %382 = shalt.err (!%p379_p7)
}
  0x11   :  { %24 = dma.hbm_to_vmem [thread:$0]  %s499_s1, 128, %s22_s19, [#allocation4]  }
  0x12   :  { %s383_s9 = scalar_lea.hbm %s500_s2, 768 }
  0x13   :  { %p384_p8 = scmp.ne.s32.totalorder %s500_s2, %s383_s9  ;;  %p387_p9 = scmp.lt.u32.totalorder %s383_s9, %s500_s2 }
  0x15   :  { %p389_p10 = pnand %p387_p9, %p384_p8 }
  0x17   :  { %392 = shalt.err (!%p389_p10)
}
  0x18   :  { %s393_s14 = scalar_lea.vmem %s445_s21, 768  ;;  %p398_p12 = scmp.lt.s32.totalorder %s445_s21, %s445_s21 }
  0x19   :  { %p394_p11 = scmp.ne.s32.totalorder %s445_s21, %s393_s14  ;;  %p399_p13 = scmp.lt.s32.totalorder %s393_s14, %s393_s14 }
  0x1b   :  { %p400_p0 = por %p399_p13, %p398_p12 }
  0x1d   :  { %p401_p1 = pnand %p400_p0, %p394_p11 }
  0x1f   :  { %404 = shalt.err (!%p401_p1)
}
  0x20   :  { %s411_s1 = smov 64   ;;  %s412_s15 = smov 4  }
  0x21   :  { %36 = dma.hbm_to_vmem [thread:$0]  %s500_s2, 768, %s445_s21, [#allocation6], %s411_s1, %s411_s1, %s412_s15  }
  0x22   :  { %405 = dma.done.wait [#allocation4], 128  }
  0x23   :  { %406 = vsyncadd [#allocation4], 4294967168 }
  0x24   :  { %407 = dma.done.wait [#allocation6], 768  }
  0x25   :  { %408 = vsyncadd [#allocation6], 4294966528  ;;  %v413_v0 = vmov 0.0   ;;  %vm414_vm0 = vmmov 0   ;;  %v349_v1 = vld [vmem:[#allocation5] sm:$0xff]   ;;  %v350_v2 = vld [vmem:[#allocation5 + $0x8] sm:$0xff]   ;;  %v285_v50 = vstv %s498_s0 }
  0x26   :  { %319 = vmatprep.subr.bf16.mxu0 %v413_v0  ;;  %323 = vmatprep.mubr.msk.bf16.mxu0 %vm414_vm0, %v413_v0  ;;  %v48_v3 = vld [vmem:[#allocation3] sm:$0xff]  ;;  %vm73_vm1 = vcmask 261120   ;;  %v351_v5 = vld [vmem:[#allocation5 + $0x10] sm:$0xff]   ;;  %v353_v20 = vld [vmem:[#allocation5 + $0x20] sm:$0xff]   ;;  %vm287_vm2 = vcmask 7168  }
  0x27   :  { %327 = vmatprep.subr.bf16.mxu1 %v413_v0  ;;  %331 = vmatprep.mubr.msk.bf16.mxu1 %vm414_vm0, %v413_v0  ;;  %v49_v4 = vpack.c.bf16 %v48_v3, %v48_v3  ;;  %v352_v6 = vld [vmem:[#allocation5 + $0x18] sm:$0xff]   ;;  %v354_v21 = vld [vmem:[#allocation5 + $0x28] sm:$0xff]  }
  0x28   :  { %320 = vmatpush3.bf16.msra.mxu0 %v349_v1  ;;  %328 = vmatpush3.bf16.msra.mxu1 %v351_v5  ;;  %v295_v7 = vld [vmem:[%s501_s3] ss:$0 sm:$0xff]  ;;  %v300_v22 = vld [vmem:[%s501_s3 + $0x1] ss:$0 sm:$0xff]  ;;  %v305_v35 = vld [vmem:[%s501_s3 + $0x2] ss:$0 sm:$0xff] }
  0x29   :  { %321 = vmatprep.subr.bf16.mxu0 %v413_v0  ;;  %329 = vmatprep.subr.bf16.mxu1 %v413_v0  ;;  %v309_v46 = vld [vmem:[%s502_s4] ss:$0 sm:$0xff] }
  0x2c   :  { %322 = vmatpush3.bf16.msra.mxu0 %v350_v2  ;;  %330 = vmatpush3.bf16.msra.mxu1 %v352_v6 }
  0x2d   :  { %335 = vmatprep.subr.bf16.mxu0 %v413_v0 }
  0x2f   :  { %324 = vmatmul.mubr.msk.bf16.vlgmr.msra.gmra.mrb[0].mxu0 %vm73_vm1, %v49_v4 }
  0x30   :  { %339 = vmatprep.mubr.msk.bf16.mxu0 %vm414_vm0, %v413_v0  ;;  %336 = vmatpush3.bf16.msra.mxu0 %v353_v20 }
  0x31   :  { %337 = vmatprep.subr.bf16.mxu0 %v413_v0 }
  0x34   :  { %338 = vmatpush3.bf16.msra.mxu0 %v354_v21 }
 0x102   :  { %v111_v8 = vpop.f32.mrb[0].mxu0 }
 0x103   :  { %v112_v9 = vadd.f32 %v295_v7, %v111_v8  ;;  %v325_v10 = vpop.f32.mrb[1].mxu0 }
 0x104   :  { %v114_v11 = vpop.f32.mrb[2].mxu0 }
 0x105   :  { %v118_v12 = vmul.f32 0.70710677, %v112_v9  ;;  %v326_v13 = vpop.f32.mrb[3].mxu0  ;;  %v117_v15 = vmul.f32 0.5, %v112_v9 }
 0x107   :  { %355 = verf.f32 %v118_v12 }
 0x111   :  { %v356_v14 = vpop.eup %355 }
 0x112   :  { %v120_v16 = vadd.f32 1.0, %v356_v14 }
 0x114   :  { %v121_v17 = vmul.f32 %v120_v16, %v117_v15 }
 0x116   :  { %v122_v18 = vadd.f32 %v121_v17, %v48_v3 }
 0x118   :  { %v123_v19 = vpack.c.bf16 %v122_v18, %v122_v18 }
 0x11a   :  { %332 = vmatmul.mubr.msk.bf16.vlgmr.msra.gmra.mrb[0].mxu1 %vm73_vm1, %v123_v19 }
 0x1ed   :  { %v186_v23 = vpop.f32.mrb[0].mxu1 }
 0x1ee   :  { %v187_v24 = vadd.f32 %v300_v22, %v186_v23  ;;  %v333_v25 = vpop.f32.mrb[1].mxu1 }
 0x1ef   :  { %v189_v26 = vpop.f32.mrb[2].mxu1 }
 0x1f0   :  { %v193_v27 = vmul.f32 0.70710677, %v187_v24  ;;  %v334_v28 = vpop.f32.mrb[3].mxu1  ;;  %v192_v30 = vmul.f32 0.5, %v187_v24 }
 0x1f2   :  { %357 = verf.f32 %v193_v27 }
 0x1fc   :  { %v358_v29 = vpop.eup %357 }
 0x1fd   :  { %v195_v31 = vadd.f32 1.0, %v358_v29 }
 0x1ff   :  { %v196_v32 = vmul.f32 %v195_v31, %v192_v30 }
 0x201   :  { %v197_v33 = vadd.f32 %v196_v32, %v122_v18 }
 0x203   :  { %v198_v34 = vpack.c.bf16 %v197_v33, %v197_v33 }
 0x205   :  { %340 = vmatmul.mubr.msk.bf16.vlgmr.msra.gmra.mrb[4].mxu0 %vm73_vm1, %v198_v34 }
 0x2d8   :  { %v261_v36 = vpop.f32.mrb[4].mxu0 }
 0x2d9   :  { %v262_v37 = vadd.f32 %v305_v35, %v261_v36  ;;  %v341_v38 = vpop.f32.mrb[5].mxu0 }
 0x2da   :  { %v264_v39 = vpop.f32.mrb[6].mxu0 }
 0x2db   :  { %v268_v40 = vmul.f32 0.70710677, %v262_v37  ;;  %v342_v41 = vpop.f32.mrb[7].mxu0  ;;  %v267_v43 = vmul.f32 0.5, %v262_v37 }
 0x2dd   :  { %359 = verf.f32 %v268_v40 }
 0x2e7   :  { %v360_v42 = vpop.eup %359 }
 0x2e8   :  { %v270_v44 = vadd.f32 1.0, %v360_v42 }
 0x2ea   :  { %v271_v45 = vmul.f32 %v270_v44, %v267_v43 }
 0x2ec   :  { %v272_v47 = vadd.f32 %v271_v45, %v197_v33 }
 0x2ee   :  { %v280_v48 = vmul.f32 %v309_v46, %v272_v47 }
 0x2f0   :  { %v281_v49 = vsel %vm73_vm1, %v280_v48, 0.0 }
 0x2f1   :  { %282 = vadd.xlane.f32.xlu0 %v281_v49 }
 0x37e   :  { %v283_v51 = vpop.xlane.xlu0 %282 }
 0x37f   :  { %v286_v52 = vadd.f32 %v285_v50, %v283_v51 }
 0x381   :  { %288 = vst.msk [vmem:[%s503_s5] sm:$0xff] %vm287_vm2, %v286_v52 }
 0x382   :  { %293 = vsyncpa [#allocation4], 1 }
 0x383   :  { %294 = vsyncpa [#allocation6], 1 }

</bundles_post_ra>
